<compile_context>
chip_gen: v7x
topology: tpu7x:2x2x1
jax: 0.10.0
libtpu: 0.0.40
codegen_flags: <defaults>
</compile_context>

<pallas_src>
import functools

import jax
import jax.numpy as jnp
from jax.experimental import pallas as pl
from jax.experimental.pallas import tpu as pltpu


def _gru_seq_kernel(x_ref, w_ih_ref, w_hh_ref, b_ih_ref, b_hh_ref,
                    out_ref, hn_ref, *, batch, seq_len, hidden):
    """Whole-sequence GRU, single grid step, everything VMEM-resident.

    x_ref:    (S*B, I)  time-major flattened input
    w_ih_ref: (I, 3H)   fused input weights, gate order r|z|n
    w_hh_ref: (H, 3H)   fused hidden weights
    b_*_ref:  (1, 3H)
    out_ref:  (B, S*H)  lane-dense output slab (reshaped to (B,S,H) outside)
    hn_ref:   (B, H)    final hidden state
    """
    f32 = jnp.float32
    B, S, H = batch, seq_len, hidden

    # ---- Prologue (off the recurrence critical path): one fused input
    # projection for the whole sequence and all three gates:
    #   gi = x @ W_i[r|z|n] + b_i[r|z|n]     -> (S*B, 3H), time-major rows.
    gi = (jnp.dot(x_ref[...].astype(f32), w_ih_ref[...].astype(f32),
                  preferred_element_type=f32)
          + b_ih_ref[...].astype(f32))

    w_hh = w_hh_ref[...].astype(f32)                       # (H, 3H)
    # Hoist the bias broadcast out of the loop (JAX does not CSE it).
    b_hh = jnp.broadcast_to(b_hh_ref[...].astype(f32), (B, 3 * H))

    # ---- Recurrence: fully unrolled (S is small & static for LSTNet).
    # One fused MXU matmul per step; static lane slices extract the gates.
    hs = []
    h = jnp.zeros((B, H), f32)
    for t in range(seq_len):
        gi_t = gi[t * B:(t + 1) * B, :]                    # static sublane slice
        gh = jnp.dot(h, w_hh, preferred_element_type=f32) + b_hh
        rz = jax.nn.sigmoid(gi_t[:, :2 * H] + gh[:, :2 * H])   # r|z in one push
        r = rz[:, :H]
        z = rz[:, H:]
        n = jnp.tanh(gi_t[:, 2 * H:] + r * gh[:, 2 * H:])
        h = n + z * (h - n)                                # == (1-z)*n + z*h
        hs.append(h)

    # ---- Single lane-dense writeback after the loop (no per-step stores).
    out_ref[...] = jnp.concatenate(hs, axis=1).astype(out_ref.dtype)
    hn_ref[...] = h.astype(hn_ref.dtype)


def gru_forward_pallas(x_bsi, w_ih, w_hh, b_ih, b_hh):
    """GRU forward (single layer, unidirectional, batch_first).

    Args:
      x_bsi: (batch, seq, input)  -- batch_first, like the PyTorch module.
      w_ih:  (input, 3*hidden)    -- transposed weight_ih_l0, gate order r,z,n.
      w_hh:  (hidden, 3*hidden)   -- transposed weight_hh_l0.
      b_ih:  (1, 3*hidden)
      b_hh:  (1, 3*hidden)

    Returns:
      output: (batch, seq, hidden)
      h_n:    (num_layers=1, batch, hidden)
    """
    B, S, I = x_bsi.shape
    H = w_hh.shape[0]
    dtype = x_bsi.dtype

    # Time-major flatten (a tiny ~KB transpose): lets the kernel slice the
    # fused input projections per step with a contiguous static sublane
    # slice and avoids any in-kernel reshape/relayout of gi.
    x_tm = jnp.transpose(x_bsi, (1, 0, 2)).reshape(S * B, I)

    kernel = functools.partial(_gru_seq_kernel, batch=B, seq_len=S, hidden=H)

    full2 = lambda i: (0, 0)

    out2d, h_last = pl.pallas_call(
        kernel,
        out_shape=(jax.ShapeDtypeStruct((B, S * H), dtype),   # lane-dense slab
                   jax.ShapeDtypeStruct((B, H), dtype)),       # final state
        grid=(1,),
        in_specs=[
            pl.BlockSpec((S * B, I), full2),      # x, time-major flat
            pl.BlockSpec((I, 3 * H), full2),      # w_ih fused (r|z|n)
            pl.BlockSpec((H, 3 * H), full2),      # w_hh fused (r|z|n)
            pl.BlockSpec((1, 3 * H), full2),      # b_ih
            pl.BlockSpec((1, 3 * H), full2),      # b_hh
        ],
        out_specs=(pl.BlockSpec((B, S * H), full2),
                   pl.BlockSpec((B, H), full2)),
        compiler_params=pltpu.CompilerParams(
            dimension_semantics=("arbitrary",)),  # sequential recurrence
    )(x_tm, w_ih, w_hh, b_ih, b_hh)

    output = out2d.reshape(B, S, H)               # contiguous, metadata-only
    h_n = h_last[None]                            # (num_layers=1, B, H)
    return output, h_n


def gru_forward_ref(x_bsi, w_ih, w_hh, b_ih, b_hh):
    """Pure-JAX reference (lax.scan), same semantics as nn.GRU."""
    B, S, I = x_bsi.shape
    H = w_hh.shape[0]
    x_sbi = jnp.transpose(x_bsi, (1, 0, 2)).astype(jnp.float32)

    def step(h, x_t):
        gi = x_t @ w_ih.astype(jnp.float32) + b_ih.astype(jnp.float32)
        gh = h @ w_hh.astype(jnp.float32) + b_hh.astype(jnp.float32)
        i_r, i_z, i_n = gi[:, :H], gi[:, H:2 * H], gi[:, 2 * H:]
        h_r, h_z, h_n = gh[:, :H], gh[:, H:2 * H], gh[:, 2 * H:]
        r = jax.nn.sigmoid(i_r + h_r)
        z = jax.nn.sigmoid(i_z + h_z)
        n = jnp.tanh(i_n + r * h_n)
        h_new = (1.0 - z) * n + z * h
        return h_new, h_new

    h0 = jnp.zeros((B, H), jnp.float32)
    h_last, out_sbh = jax.lax.scan(step, h0, x_sbi)
    output = jnp.transpose(out_sbh, (1, 0, 2)).astype(x_bsi.dtype)
    return output, h_last[None].astype(x_bsi.dtype)


if __name__ == "__main__":
    # RecurrentModule('GRU', input_size=16, hidden_size=32, num_layers=1)
    batch, seq, input_size, hidden_size = 2, 8, 16, 32

    key = jax.random.PRNGKey(0)
    kx, kwi, kwh, kbi, kbh = jax.random.split(key, 5)

    # PyTorch-style init: U(-1/sqrt(H), 1/sqrt(H)), deterministic here.
    bound = 1.0 / jnp.sqrt(jnp.float32(hidden_size))
    x = jax.random.normal(kx, (batch, seq, input_size), jnp.float32)
    w_ih = jax.random.uniform(kwi, (input_size, 3 * hidden_size),
                              jnp.float32, -bound, bound)
    w_hh = jax.random.uniform(kwh, (hidden_size, 3 * hidden_size),
                              jnp.float32, -bound, bound)
    b_ih = jax.random.uniform(kbi, (1, 3 * hidden_size),
                              jnp.float32, -bound, bound)
    b_hh = jax.random.uniform(kbh, (1, 3 * hidden_size),
                              jnp.float32, -bound, bound)

    output, h_n = gru_forward_pallas(x, w_ih, w_hh, b_ih, b_hh)
    output = jax.block_until_ready(output)
    h_n = jax.block_until_ready(h_n)

    # Cross-check against the pure-JAX reference.
    out_ref, h_ref = gru_forward_ref(x, w_ih, w_hh, b_ih, b_hh)
    assert output.shape == (batch, seq, hidden_size)
    assert h_n.shape == (1, batch, hidden_size)
    assert jnp.allclose(output, out_ref, atol=1e-5, rtol=1e-5)
    assert jnp.allclose(h_n, h_ref, atol=1e-5, rtol=1e-5)

    print("KERNEL_OK")
</pallas_src>

<mosaic_0001>
module attributes {stable_mosaic.version = 11 : i64} {
  func.func @_gru_seq_kernel(%arg0: i32, %arg1: memref<16x16xf32, #tpu.memory_space<vmem>>, %arg2: memref<16x96xf32, #tpu.memory_space<vmem>>, %arg3: memref<32x96xf32, #tpu.memory_space<vmem>>, %arg4: memref<1x96xf32, #tpu.memory_space<vmem>>, %arg5: memref<1x96xf32, #tpu.memory_space<vmem>>, %arg6: memref<2x256xf32, #tpu.memory_space<vmem>>, %arg7: memref<2x32xf32, #tpu.memory_space<vmem>>) attributes {dimension_semantics = [#tpu.dimension_semantics<arbitrary>], iteration_bounds = array<i64: 1>, scalar_prefetch = 0 : i64, scratch_operands = 0 : i64, tpu.core_type = #tpu.core_type<tc>, window_params = [{pipeline_mode = #tpu.pipeline_mode<synchronous>, transform_indices = @transform_0, window_bounds = array<i64: 16, 16>}, {pipeline_mode = #tpu.pipeline_mode<synchronous>, transform_indices = @transform_1, window_bounds = array<i64: 16, 96>}, {pipeline_mode = #tpu.pipeline_mode<synchronous>, transform_indices = @transform_2, window_bounds = array<i64: 32, 96>}, {pipeline_mode = #tpu.pipeline_mode<synchronous>, transform_indices = @transform_3, window_bounds = array<i64: 1, 96>}, {pipeline_mode = #tpu.pipeline_mode<synchronous>, transform_indices = @transform_4, window_bounds = array<i64: 1, 96>}, {pipeline_mode = #tpu.pipeline_mode<synchronous>, transform_indices = @transform_5, window_bounds = array<i64: 2, 256>}, {pipeline_mode = #tpu.pipeline_mode<synchronous>, transform_indices = @transform_6, window_bounds = array<i64: 2, 32>}]} {
    %c0 = arith.constant 0 : index
    %c0_0 = arith.constant 0 : index
    %0 = vector.load %arg1[%c0, %c0_0] : memref<16x16xf32, #tpu.memory_space<vmem>>, vector<16x16xf32>
    %c0_1 = arith.constant 0 : index
    %c0_2 = arith.constant 0 : index
    %1 = vector.load %arg2[%c0_1, %c0_2] : memref<16x96xf32, #tpu.memory_space<vmem>>, vector<16x96xf32>
    %cst = arith.constant dense<0.000000e+00> : vector<16x96xf32>
    %2 = tpu.matmul %0, %1, %cst {dimension_numbers = #tpu.dot_dimension_numbers<[1], [0], [0], [1], [0, 0, 1, 1], [], []>} : vector<16x16xf32>, vector<16x96xf32>, vector<16x96xf32> -> vector<16x96xf32>
    %c0_3 = arith.constant 0 : index
    %c0_4 = arith.constant 0 : index
    %3 = vector.load %arg4[%c0_3, %c0_4] : memref<1x96xf32, #tpu.memory_space<vmem>>, vector<1x96xf32>
    %4 = vector.broadcast %3 : vector<1x96xf32> to vector<16x96xf32>
    %5 = arith.addf %2, %4 : vector<16x96xf32>
    %c0_5 = arith.constant 0 : index
    %c0_6 = arith.constant 0 : index
    %6 = vector.load %arg3[%c0_5, %c0_6] : memref<32x96xf32, #tpu.memory_space<vmem>>, vector<32x96xf32>
    %c0_7 = arith.constant 0 : index
    %c0_8 = arith.constant 0 : index
    %7 = vector.load %arg5[%c0_7, %c0_8] : memref<1x96xf32, #tpu.memory_space<vmem>>, vector<1x96xf32>
    %8 = vector.shape_cast %7 : vector<1x96xf32> to vector<1x96xf32>
    %9 = vector.broadcast %8 : vector<1x96xf32> to vector<2x96xf32>
    %cst_9 = arith.constant 0.000000e+00 : f32
    %10 = vector.broadcast %cst_9 : f32 to vector<2x32xf32>
    %11 = vector.extract_strided_slice %5 {offsets = [0, 0], sizes = [2, 96], strides = [1, 1]} : vector<16x96xf32> to vector<2x96xf32>
    %cst_10 = arith.constant dense<0.000000e+00> : vector<2x96xf32>
    %12 = tpu.matmul %10, %6, %cst_10 {dimension_numbers = #tpu.dot_dimension_numbers<[1], [0], [0], [1], [0, 0, 1, 1], [], []>} : vector<2x32xf32>, vector<32x96xf32>, vector<2x96xf32> -> vector<2x96xf32>
    %13 = arith.addf %12, %9 : vector<2x96xf32>
    %14 = vector.extract_strided_slice %11 {offsets = [0, 0], sizes = [2, 64], strides = [1, 1]} : vector<2x96xf32> to vector<2x64xf32>
    %15 = vector.extract_strided_slice %13 {offsets = [0, 0], sizes = [2, 64], strides = [1, 1]} : vector<2x96xf32> to vector<2x64xf32>
    %16 = arith.addf %14, %15 : vector<2x64xf32>
    %17 = arith.negf %16 : vector<2x64xf32>
    %18 = math.exp %17 : vector<2x64xf32>
    %cst_11 = arith.constant 1.000000e+00 : f32
    %19 = vector.broadcast %cst_11 : f32 to vector<2x64xf32>
    %20 = arith.addf %19, %18 : vector<2x64xf32>
    %21 = arith.divf %19, %20 : vector<2x64xf32>
    %22 = vector.extract_strided_slice %21 {offsets = [0, 0], sizes = [2, 32], strides = [1, 1]} : vector<2x64xf32> to vector<2x32xf32>
    %23 = vector.extract_strided_slice %21 {offsets = [0, 32], sizes = [2, 32], strides = [1, 1]} : vector<2x64xf32> to vector<2x32xf32>
    %24 = vector.extract_strided_slice %11 {offsets = [0, 64], sizes = [2, 32], strides = [1, 1]} : vector<2x96xf32> to vector<2x32xf32>
    %25 = vector.extract_strided_slice %13 {offsets = [0, 64], sizes = [2, 32], strides = [1, 1]} : vector<2x96xf32> to vector<2x32xf32>
    %26 = arith.mulf %22, %25 : vector<2x32xf32>
    %27 = arith.addf %24, %26 : vector<2x32xf32>
    %28 = math.tanh %27 : vector<2x32xf32>
    %29 = arith.subf %10, %28 : vector<2x32xf32>
    %30 = arith.mulf %23, %29 : vector<2x32xf32>
    %31 = arith.addf %28, %30 : vector<2x32xf32>
    %32 = vector.extract_strided_slice %5 {offsets = [2, 0], sizes = [2, 96], strides = [1, 1]} : vector<16x96xf32> to vector<2x96xf32>
    %cst_12 = arith.constant dense<0.000000e+00> : vector<2x96xf32>
    %33 = tpu.matmul %31, %6, %cst_12 {dimension_numbers = #tpu.dot_dimension_numbers<[1], [0], [0], [1], [0, 0, 1, 1], [], []>} : vector<2x32xf32>, vector<32x96xf32>, vector<2x96xf32> -> vector<2x96xf32>
    %34 = arith.addf %33, %9 : vector<2x96xf32>
    %35 = vector.extract_strided_slice %32 {offsets = [0, 0], sizes = [2, 64], strides = [1, 1]} : vector<2x96xf32> to vector<2x64xf32>
    %36 = vector.extract_strided_slice %34 {offsets = [0, 0], sizes = [2, 64], strides = [1, 1]} : vector<2x96xf32> to vector<2x64xf32>
    %37 = arith.addf %35, %36 : vector<2x64xf32>
    %38 = arith.negf %37 : vector<2x64xf32>
    %39 = math.exp %38 : vector<2x64xf32>
    %cst_13 = arith.constant 1.000000e+00 : f32
    %40 = vector.broadcast %cst_13 : f32 to vector<2x64xf32>
    %41 = arith.addf %40, %39 : vector<2x64xf32>
    %42 = arith.divf %40, %41 : vector<2x64xf32>
    %43 = vector.extract_strided_slice %42 {offsets = [0, 0], sizes = [2, 32], strides = [1, 1]} : vector<2x64xf32> to vector<2x32xf32>
    %44 = vector.extract_strided_slice %42 {offsets = [0, 32], sizes = [2, 32], strides = [1, 1]} : vector<2x64xf32> to vector<2x32xf32>
    %45 = vector.extract_strided_slice %32 {offsets = [0, 64], sizes = [2, 32], strides = [1, 1]} : vector<2x96xf32> to vector<2x32xf32>
    %46 = vector.extract_strided_slice %34 {offsets = [0, 64], sizes = [2, 32], strides = [1, 1]} : vector<2x96xf32> to vector<2x32xf32>
    %47 = arith.mulf %43, %46 : vector<2x32xf32>
    %48 = arith.addf %45, %47 : vector<2x32xf32>
    %49 = math.tanh %48 : vector<2x32xf32>
    %50 = arith.subf %31, %49 : vector<2x32xf32>
    %51 = arith.mulf %44, %50 : vector<2x32xf32>
    %52 = arith.addf %49, %51 : vector<2x32xf32>
    %53 = vector.extract_strided_slice %5 {offsets = [4, 0], sizes = [2, 96], strides = [1, 1]} : vector<16x96xf32> to vector<2x96xf32>
    %cst_14 = arith.constant dense<0.000000e+00> : vector<2x96xf32>
    %54 = tpu.matmul %52, %6, %cst_14 {dimension_numbers = #tpu.dot_dimension_numbers<[1], [0], [0], [1], [0, 0, 1, 1], [], []>} : vector<2x32xf32>, vector<32x96xf32>, vector<2x96xf32> -> vector<2x96xf32>
    %55 = arith.addf %54, %9 : vector<2x96xf32>
    %56 = vector.extract_strided_slice %53 {offsets = [0, 0], sizes = [2, 64], strides = [1, 1]} : vector<2x96xf32> to vector<2x64xf32>
    %57 = vector.extract_strided_slice %55 {offsets = [0, 0], sizes = [2, 64], strides = [1, 1]} : vector<2x96xf32> to vector<2x64xf32>
    %58 = arith.addf %56, %57 : vector<2x64xf32>
    %59 = arith.negf %58 : vector<2x64xf32>
    %60 = math.exp %59 : vector<2x64xf32>
    %cst_15 = arith.constant 1.000000e+00 : f32
    %61 = vector.broadcast %cst_15 : f32 to vector<2x64xf32>
    %62 = arith.addf %61, %60 : vector<2x64xf32>
    %63 = arith.divf %61, %62 : vector<2x64xf32>
    %64 = vector.extract_strided_slice %63 {offsets = [0, 0], sizes = [2, 32], strides = [1, 1]} : vector<2x64xf32> to vector<2x32xf32>
    %65 = vector.extract_strided_slice %63 {offsets = [0, 32], sizes = [2, 32], strides = [1, 1]} : vector<2x64xf32> to vector<2x32xf32>
    %66 = vector.extract_strided_slice %53 {offsets = [0, 64], sizes = [2, 32], strides = [1, 1]} : vector<2x96xf32> to vector<2x32xf32>
    %67 = vector.extract_strided_slice %55 {offsets = [0, 64], sizes = [2, 32], strides = [1, 1]} : vector<2x96xf32> to vector<2x32xf32>
    %68 = arith.mulf %64, %67 : vector<2x32xf32>
    %69 = arith.addf %66, %68 : vector<2x32xf32>
    %70 = math.tanh %69 : vector<2x32xf32>
    %71 = arith.subf %52, %70 : vector<2x32xf32>
    %72 = arith.mulf %65, %71 : vector<2x32xf32>
    %73 = arith.addf %70, %72 : vector<2x32xf32>
    %74 = vector.extract_strided_slice %5 {offsets = [6, 0], sizes = [2, 96], strides = [1, 1]} : vector<16x96xf32> to vector<2x96xf32>
    %cst_16 = arith.constant dense<0.000000e+00> : vector<2x96xf32>
    %75 = tpu.matmul %73, %6, %cst_16 {dimension_numbers = #tpu.dot_dimension_numbers<[1], [0], [0], [1], [0, 0, 1, 1], [], []>} : vector<2x32xf32>, vector<32x96xf32>, vector<2x96xf32> -> vector<2x96xf32>
    %76 = arith.addf %75, %9 : vector<2x96xf32>
    %77 = vector.extract_strided_slice %74 {offsets = [0, 0], sizes = [2, 64], strides = [1, 1]} : vector<2x96xf32> to vector<2x64xf32>
    %78 = vector.extract_strided_slice %76 {offsets = [0, 0], sizes = [2, 64], strides = [1, 1]} : vector<2x96xf32> to vector<2x64xf32>
    %79 = arith.addf %77, %78 : vector<2x64xf32>
    %80 = arith.negf %79 : vector<2x64xf32>
    %81 = math.exp %80 : vector<2x64xf32>
    %cst_17 = arith.constant 1.000000e+00 : f32
    %82 = vector.broadcast %cst_17 : f32 to vector<2x64xf32>
    %83 = arith.addf %82, %81 : vector<2x64xf32>
    %84 = arith.divf %82, %83 : vector<2x64xf32>
    %85 = vector.extract_strided_slice %84 {offsets = [0, 0], sizes = [2, 32], strides = [1, 1]} : vector<2x64xf32> to vector<2x32xf32>
    %86 = vector.extract_strided_slice %84 {offsets = [0, 32], sizes = [2, 32], strides = [1, 1]} : vector<2x64xf32> to vector<2x32xf32>
    %87 = vector.extract_strided_slice %74 {offsets = [0, 64], sizes = [2, 32], strides = [1, 1]} : vector<2x96xf32> to vector<2x32xf32>
    %88 = vector.extract_strided_slice %76 {offsets = [0, 64], sizes = [2, 32], strides = [1, 1]} : vector<2x96xf32> to vector<2x32xf32>
    %89 = arith.mulf %85, %88 : vector<2x32xf32>
    %90 = arith.addf %87, %89 : vector<2x32xf32>
    %91 = math.tanh %90 : vector<2x32xf32>
    %92 = arith.subf %73, %91 : vector<2x32xf32>
    %93 = arith.mulf %86, %92 : vector<2x32xf32>
    %94 = arith.addf %91, %93 : vector<2x32xf32>
    %95 = vector.extract_strided_slice %5 {offsets = [8, 0], sizes = [2, 96], strides = [1, 1]} : vector<16x96xf32> to vector<2x96xf32>
    %cst_18 = arith.constant dense<0.000000e+00> : vector<2x96xf32>
    %96 = tpu.matmul %94, %6, %cst_18 {dimension_numbers = #tpu.dot_dimension_numbers<[1], [0], [0], [1], [0, 0, 1, 1], [], []>} : vector<2x32xf32>, vector<32x96xf32>, vector<2x96xf32> -> vector<2x96xf32>
    %97 = arith.addf %96, %9 : vector<2x96xf32>
    %98 = vector.extract_strided_slice %95 {offsets = [0, 0], sizes = [2, 64], strides = [1, 1]} : vector<2x96xf32> to vector<2x64xf32>
    %99 = vector.extract_strided_slice %97 {offsets = [0, 0], sizes = [2, 64], strides = [1, 1]} : vector<2x96xf32> to vector<2x64xf32>
    %100 = arith.addf %98, %99 : vector<2x64xf32>
    %101 = arith.negf %100 : vector<2x64xf32>
    %102 = math.exp %101 : vector<2x64xf32>
    %cst_19 = arith.constant 1.000000e+00 : f32
    %103 = vector.broadcast %cst_19 : f32 to vector<2x64xf32>
    %104 = arith.addf %103, %102 : vector<2x64xf32>
    %105 = arith.divf %103, %104 : vector<2x64xf32>
    %106 = vector.extract_strided_slice %105 {offsets = [0, 0], sizes = [2, 32], strides = [1, 1]} : vector<2x64xf32> to vector<2x32xf32>
    %107 = vector.extract_strided_slice %105 {offsets = [0, 32], sizes = [2, 32], strides = [1, 1]} : vector<2x64xf32> to vector<2x32xf32>
    %108 = vector.extract_strided_slice %95 {offsets = [0, 64], sizes = [2, 32], strides = [1, 1]} : vector<2x96xf32> to vector<2x32xf32>
    %109 = vector.extract_strided_slice %97 {offsets = [0, 64], sizes = [2, 32], strides = [1, 1]} : vector<2x96xf32> to vector<2x32xf32>
    %110 = arith.mulf %106, %109 : vector<2x32xf32>
    %111 = arith.addf %108, %110 : vector<2x32xf32>
    %112 = math.tanh %111 : vector<2x32xf32>
    %113 = arith.subf %94, %112 : vector<2x32xf32>
    %114 = arith.mulf %107, %113 : vector<2x32xf32>
    %115 = arith.addf %112, %114 : vector<2x32xf32>
    %116 = vector.extract_strided_slice %5 {offsets = [10, 0], sizes = [2, 96], strides = [1, 1]} : vector<16x96xf32> to vector<2x96xf32>
    %cst_20 = arith.constant dense<0.000000e+00> : vector<2x96xf32>
    %117 = tpu.matmul %115, %6, %cst_20 {dimension_numbers = #tpu.dot_dimension_numbers<[1], [0], [0], [1], [0, 0, 1, 1], [], []>} : vector<2x32xf32>, vector<32x96xf32>, vector<2x96xf32> -> vector<2x96xf32>
    %118 = arith.addf %117, %9 : vector<2x96xf32>
    %119 = vector.extract_strided_slice %116 {offsets = [0, 0], sizes = [2, 64], strides = [1, 1]} : vector<2x96xf32> to vector<2x64xf32>
    %120 = vector.extract_strided_slice %118 {offsets = [0, 0], sizes = [2, 64], strides = [1, 1]} : vector<2x96xf32> to vector<2x64xf32>
    %121 = arith.addf %119, %120 : vector<2x64xf32>
    %122 = arith.negf %121 : vector<2x64xf32>
    %123 = math.exp %122 : vector<2x64xf32>
    %cst_21 = arith.constant 1.000000e+00 : f32
    %124 = vector.broadcast %cst_21 : f32 to vector<2x64xf32>
    %125 = arith.addf %124, %123 : vector<2x64xf32>
    %126 = arith.divf %124, %125 : vector<2x64xf32>
    %127 = vector.extract_strided_slice %126 {offsets = [0, 0], sizes = [2, 32], strides = [1, 1]} : vector<2x64xf32> to vector<2x32xf32>
    %128 = vector.extract_strided_slice %126 {offsets = [0, 32], sizes = [2, 32], strides = [1, 1]} : vector<2x64xf32> to vector<2x32xf32>
    %129 = vector.extract_strided_slice %116 {offsets = [0, 64], sizes = [2, 32], strides = [1, 1]} : vector<2x96xf32> to vector<2x32xf32>
    %130 = vector.extract_strided_slice %118 {offsets = [0, 64], sizes = [2, 32], strides = [1, 1]} : vector<2x96xf32> to vector<2x32xf32>
    %131 = arith.mulf %127, %130 : vector<2x32xf32>
    %132 = arith.addf %129, %131 : vector<2x32xf32>
    %133 = math.tanh %132 : vector<2x32xf32>
    %134 = arith.subf %115, %133 : vector<2x32xf32>
    %135 = arith.mulf %128, %134 : vector<2x32xf32>
    %136 = arith.addf %133, %135 : vector<2x32xf32>
    %137 = vector.extract_strided_slice %5 {offsets = [12, 0], sizes = [2, 96], strides = [1, 1]} : vector<16x96xf32> to vector<2x96xf32>
    %cst_22 = arith.constant dense<0.000000e+00> : vector<2x96xf32>
    %138 = tpu.matmul %136, %6, %cst_22 {dimension_numbers = #tpu.dot_dimension_numbers<[1], [0], [0], [1], [0, 0, 1, 1], [], []>} : vector<2x32xf32>, vector<32x96xf32>, vector<2x96xf32> -> vector<2x96xf32>
    %139 = arith.addf %138, %9 : vector<2x96xf32>
    %140 = vector.extract_strided_slice %137 {offsets = [0, 0], sizes = [2, 64], strides = [1, 1]} : vector<2x96xf32> to vector<2x64xf32>
    %141 = vector.extract_strided_slice %139 {offsets = [0, 0], sizes = [2, 64], strides = [1, 1]} : vector<2x96xf32> to vector<2x64xf32>
    %142 = arith.addf %140, %141 : vector<2x64xf32>
    %143 = arith.negf %142 : vector<2x64xf32>
    %144 = math.exp %143 : vector<2x64xf32>
    %cst_23 = arith.constant 1.000000e+00 : f32
    %145 = vector.broadcast %cst_23 : f32 to vector<2x64xf32>
    %146 = arith.addf %145, %144 : vector<2x64xf32>
    %147 = arith.divf %145, %146 : vector<2x64xf32>
    %148 = vector.extract_strided_slice %147 {offsets = [0, 0], sizes = [2, 32], strides = [1, 1]} : vector<2x64xf32> to vector<2x32xf32>
    %149 = vector.extract_strided_slice %147 {offsets = [0, 32], sizes = [2, 32], strides = [1, 1]} : vector<2x64xf32> to vector<2x32xf32>
    %150 = vector.extract_strided_slice %137 {offsets = [0, 64], sizes = [2, 32], strides = [1, 1]} : vector<2x96xf32> to vector<2x32xf32>
    %151 = vector.extract_strided_slice %139 {offsets = [0, 64], sizes = [2, 32], strides = [1, 1]} : vector<2x96xf32> to vector<2x32xf32>
    %152 = arith.mulf %148, %151 : vector<2x32xf32>
    %153 = arith.addf %150, %152 : vector<2x32xf32>
    %154 = math.tanh %153 : vector<2x32xf32>
    %155 = arith.subf %136, %154 : vector<2x32xf32>
    %156 = arith.mulf %149, %155 : vector<2x32xf32>
    %157 = arith.addf %154, %156 : vector<2x32xf32>
    %158 = vector.extract_strided_slice %5 {offsets = [14, 0], sizes = [2, 96], strides = [1, 1]} : vector<16x96xf32> to vector<2x96xf32>
    %cst_24 = arith.constant dense<0.000000e+00> : vector<2x96xf32>
    %159 = tpu.matmul %157, %6, %cst_24 {dimension_numbers = #tpu.dot_dimension_numbers<[1], [0], [0], [1], [0, 0, 1, 1], [], []>} : vector<2x32xf32>, vector<32x96xf32>, vector<2x96xf32> -> vector<2x96xf32>
    %160 = arith.addf %159, %9 : vector<2x96xf32>
    %161 = vector.extract_strided_slice %158 {offsets = [0, 0], sizes = [2, 64], strides = [1, 1]} : vector<2x96xf32> to vector<2x64xf32>
    %162 = vector.extract_strided_slice %160 {offsets = [0, 0], sizes = [2, 64], strides = [1, 1]} : vector<2x96xf32> to vector<2x64xf32>
    %163 = arith.addf %161, %162 : vector<2x64xf32>
    %164 = arith.negf %163 : vector<2x64xf32>
    %165 = math.exp %164 : vector<2x64xf32>
    %cst_25 = arith.constant 1.000000e+00 : f32
    %166 = vector.broadcast %cst_25 : f32 to vector<2x64xf32>
    %167 = arith.addf %166, %165 : vector<2x64xf32>
    %168 = arith.divf %166, %167 : vector<2x64xf32>
    %169 = vector.extract_strided_slice %168 {offsets = [0, 0], sizes = [2, 32], strides = [1, 1]} : vector<2x64xf32> to vector<2x32xf32>
    %170 = vector.extract_strided_slice %168 {offsets = [0, 32], sizes = [2, 32], strides = [1, 1]} : vector<2x64xf32> to vector<2x32xf32>
    %171 = vector.extract_strided_slice %158 {offsets = [0, 64], sizes = [2, 32], strides = [1, 1]} : vector<2x96xf32> to vector<2x32xf32>
    %172 = vector.extract_strided_slice %160 {offsets = [0, 64], sizes = [2, 32], strides = [1, 1]} : vector<2x96xf32> to vector<2x32xf32>
    %173 = arith.mulf %169, %172 : vector<2x32xf32>
    %174 = arith.addf %171, %173 : vector<2x32xf32>
    %175 = math.tanh %174 : vector<2x32xf32>
    %176 = arith.subf %157, %175 : vector<2x32xf32>
    %177 = arith.mulf %170, %176 : vector<2x32xf32>
    %178 = arith.addf %175, %177 : vector<2x32xf32>
    %179 = tpu.concatenate %31, %52, %73, %94, %115, %136, %157, %178 in 1 : vector<2x32xf32>, vector<2x32xf32>, vector<2x32xf32>, vector<2x32xf32>, vector<2x32xf32>, vector<2x32xf32>, vector<2x32xf32>, vector<2x32xf32> -> vector<2x256xf32>
    %c0_26 = arith.constant 0 : index
    %c0_27 = arith.constant 0 : index
    %180 = vector.load %arg6[%c0_26, %c0_27] : memref<2x256xf32, #tpu.memory_space<vmem>>, vector<2x256xf32>
    tpu.vector_store %arg6[%c0_26, %c0_27], %179 {strides = array<i32>} : memref<2x256xf32, #tpu.memory_space<vmem>>, vector<2x256xf32>,
    %c0_28 = arith.constant 0 : index
    %c0_29 = arith.constant 0 : index
    %181 = vector.load %arg7[%c0_28, %c0_29] : memref<2x32xf32, #tpu.memory_space<vmem>>, vector<2x32xf32>
    tpu.vector_store %arg7[%c0_28, %c0_29], %178 {strides = array<i32>} : memref<2x32xf32, #tpu.memory_space<vmem>>, vector<2x32xf32>,
    return
  }
  func.func @transform_0(%arg0: i32) -> (i32, i32) {
    %c0_i32 = arith.constant 0 : i32
    %c0_i32_0 = arith.constant 0 : i32
    %c0_i32_1 = arith.constant 0 : i32
    return %c0_i32, %c0_i32_0 : i32, i32
  }
  func.func @transform_1(%arg0: i32) -> (i32, i32) {
    %c0_i32 = arith.constant 0 : i32
    %c0_i32_0 = arith.constant 0 : i32
    %c0_i32_1 = arith.constant 0 : i32
    return %c0_i32, %c0_i32_0 : i32, i32
  }
  func.func @transform_2(%arg0: i32) -> (i32, i32) {
    %c0_i32 = arith.constant 0 : i32
    %c0_i32_0 = arith.constant 0 : i32
    %c0_i32_1 = arith.constant 0 : i32
    return %c0_i32, %c0_i32_0 : i32, i32
  }
  func.func @transform_3(%arg0: i32) -> (i32, i32) {
    %c0_i32 = arith.constant 0 : i32
    %c0_i32_0 = arith.constant 0 : i32
    %c0_i32_1 = arith.constant 0 : i32
    return %c0_i32, %c0_i32_0 : i32, i32
  }
  func.func @transform_4(%arg0: i32) -> (i32, i32) {
    %c0_i32 = arith.constant 0 : i32
    %c0_i32_0 = arith.constant 0 : i32
    %c0_i32_1 = arith.constant 0 : i32
    return %c0_i32, %c0_i32_0 : i32, i32
  }
  func.func @transform_5(%arg0: i32) -> (i32, i32) {
    %c0_i32 = arith.constant 0 : i32
    %c0_i32_0 = arith.constant 0 : i32
    %c0_i32_1 = arith.constant 0 : i32
    return %c0_i32, %c0_i32_0 : i32, i32
  }
  func.func @transform_6(%arg0: i32) -> (i32, i32) {
    %c0_i32 = arith.constant 0 : i32
    %c0_i32_0 = arith.constant 0 : i32
    %c0_i32_1 = arith.constant 0 : i32
    return %c0_i32, %c0_i32_0 : i32, i32
  }
}

</mosaic_0001>

<bundles_post_ra>
// kernel: tpu_custom_call.1
= control target key start
LH: loop header
LB: loop body
LE: loop exit
PB: predicated region body
PF: predicated region fallthrough
CT: control target
= control target key end

     0   :  { %12 = vsyncpa [#allocation3], 0  ;;  %s1818_s0 = inlined_call_operand.hbm [shape: f32[16,16], index: 0, kind: input, shape index: {}]   ;;  %s1819_s1 = inlined_call_operand.hbm [shape: f32[16,96], index: 1, kind: input, shape index: {}]   ;;  %s1820_s2 = inlined_call_operand.hbm [shape: f32[32,96], index: 2, kind: input, shape index: {}]   ;;  %s1821_s3 = inlined_call_operand.vmem [shape: f32[1,96], index: 3, kind: input, shape index: {}]   ;;  %s1822_s4 = inlined_call_operand.vmem [shape: f32[1,96], index: 4, kind: input, shape index: {}]   ;;  %s1823_s5 = inlined_call_operand.hbm [shape: f32[2,256], index: 5, kind: output, shape index: {0}]   ;;  %s1824_s6 = inlined_call_operand.hbm [shape: f32[2,32], index: 6, kind: output, shape index: {1}]  }
   0x1   :  { %13 = vsyncpa [#allocation6], 0 }
   0x2   :  { %14 = vsyncpa [#allocation4], 0 }
   0x3   :  { %15 = vsyncpa [#allocation10], 0  ;;  %s1508_s21 = smov [#allocation5]   ;;  %s1509_s23 = smov [#allocation2]  }
   0x4   :  { %s33_s22 = sshll.u32 %s1508_s21, 4  ;;  %s21_s24 = sshll.u32 %s1509_s23, 4  ;;  %s34_s22 = int_to_ptr.vmem [resolvable:$true] %s33_s22  ;;  %s1556_s24 = int_to_ptr.vmem [resolvable:$true] %s21_s24 }
   0x5   :  { %s1390_s27 = scalar_lea.hbm %s1819_s1, 256 }
   0x6   :  { %p1391_p0 = scmp.ne.s32.totalorder %s1819_s1, %s1390_s27  ;;  %p1394_p1 = scmp.lt.u32.totalorder %s1390_s27, %s1819_s1 }
   0x8   :  { %p1396_p2 = pnand %p1394_p1, %p1391_p0 }
   0xa   :  { %1399 = shalt.err (!%p1396_p2)
}
   0xb   :  { %s1400_s8 = scalar_lea.vmem %s34_s22, 256  ;;  %p1405_p4 = scmp.lt.s32.totalorder %s34_s22, %s34_s22 }
   0xc   :  { %p1401_p3 = scmp.ne.s32.totalorder %s34_s22, %s1400_s8  ;;  %p1406_p5 = scmp.lt.s32.totalorder %s1400_s8, %s1400_s8 }
   0xe   :  { %p1407_p6 = por %p1406_p5, %p1405_p4 }
  0x10   :  { %p1408_p7 = pnand %p1407_p6, %p1401_p3 }
  0x12   :  { %1411 = shalt.err (!%p1408_p7)
}
  0x13   :  { %s1510_s9 = smov 128   ;;  %s1511_s10 = smov 8  }
  0x14   :  { %39 = dma.hbm_to_vmem [thread:$0]  %s1819_s1, 256, %s34_s22, [#allocation6], %s1510_s9, %s1510_s9, %s1511_s10  }
  0x15   :  { %s1412_s15 = scalar_lea.hbm %s1818_s0, 256 }
  0x16   :  { %p1413_p8 = scmp.ne.s32.totalorder %s1818_s0, %s1412_s15  ;;  %p1416_p9 = scmp.lt.u32.totalorder %s1412_s15, %s1818_s0 }
  0x18   :  { %p1418_p10 = pnand %p1416_p9, %p1413_p8 }
  0x1a   :  { %1421 = shalt.err (!%p1418_p10)
}
  0x1b   :  { %s1422_s20 = scalar_lea.vmem %s1556_s24, 256  ;;  %p1427_p12 = scmp.lt.s32.totalorder %s1556_s24, %s1556_s24 }
  0x1c   :  { %p1423_p11 = scmp.ne.s32.totalorder %s1556_s24, %s1422_s20  ;;  %p1428_p13 = scmp.lt.s32.totalorder %s1422_s20, %s1422_s20 }
  0x1e   :  { %p1429_p0 = por %p1428_p13, %p1427_p12 }
  0x20   :  { %p1430_p1 = pnand %p1429_p0, %p1423_p11 }
  0x22   :  { %1433 = shalt.err (!%p1430_p1)
}
  0x23   :  { %27 = dma.hbm_to_vmem [thread:$0]  %s1818_s0, 256, %s1556_s24, [#allocation3], %s1510_s9, %s1510_s9, %s1511_s10  }
  0x24   :  { %s1512_s22 = smov [#allocation7]   ;;  %s1434_s27 = scalar_lea.hbm %s1820_s2, 512 }
  0x25   :  { %s45_s23 = sshll.u32 %s1512_s22, 4  ;;  %p1435_p2 = scmp.ne.s32.totalorder %s1820_s2, %s1434_s27  ;;  %s46_s23 = int_to_ptr.vmem [resolvable:$true] %s45_s23 }
  0x26   :  { %p1438_p3 = scmp.lt.u32.totalorder %s1434_s27, %s1820_s2 }
  0x28   :  { %p1440_p4 = pnand %p1438_p3, %p1435_p2 }
  0x2a   :  { %1443 = shalt.err (!%p1440_p4)
}
  0x2b   :  { %s1444_s8 = scalar_lea.vmem %s46_s23, 512  ;;  %p1449_p6 = scmp.lt.s32.totalorder %s46_s23, %s46_s23 }
  0x2c   :  { %p1445_p5 = scmp.ne.s32.totalorder %s46_s23, %s1444_s8  ;;  %p1450_p7 = scmp.lt.s32.totalorder %s1444_s8, %s1444_s8 }
  0x2e   :  { %p1451_p8 = por %p1450_p7, %p1449_p6 }
  0x30   :  { %p1452_p9 = pnand %p1451_p8, %p1445_p5 }
  0x32   :  { %1455 = shalt.err (!%p1452_p9)
}
  0x33   :  { %51 = dma.hbm_to_vmem [thread:$0]  %s1820_s2, 512, %s46_s23, [#allocation6], %s1510_s9, %s1510_s9, %s1511_s10  }
  0x34   :  { %1500 = dma.done.wait [#allocation3], 256  }
  0x35   :  { %1501 = vsyncadd [#allocation3], 4294967040 }
  0x36   :  { %1502 = dma.done.wait [#allocation6], 768  }
  0x37   :  { %1503 = vsyncadd [#allocation6], 4294966528  ;;  %v1513_v0 = vmov 0.0|0.0   ;;  %vm1514_vm0 = vmmov 0   ;;  %v1515_v1 = vmov 0.0   ;;  %v158_v2 = vld [vmem:[#allocation7] sm:$0xff] }
  0x38   :  { %1281 = vmatprep.subr.bf16.mxu1 %v1513_v0  ;;  %1197 = vmatprep.mubr.msk.f32.mxu1 %vm1514_vm0, %v1515_v1  ;;  %v159_v3 = vld [vmem:[#allocation7 + $0x8] sm:$0xff]  ;;  %v67_v4 = vld [vmem:[#allocation5] sm:$0xff]  ;;  %vm76_vm1 = vcmask 130048   ;;  %v68_v6 = vld [vmem:[#allocation5 + $0x8] sm:$0xff]  ;;  %s1516_s12 = smov 64   ;;  %vm169_vm2 = vcmask 261120  }
  0x39   :  { %v1611_v5 = vpack.c.bf16 %v159_v3, %v158_v2  ;;  %v160_v7 = vld [vmem:[#allocation7 + $0x10] sm:$0xff]  ;;  %v161_v8 = vld [vmem:[#allocation7 + $0x18] sm:$0xff]  ;;  %v1277_v9 = vpack.c.bf16 %v68_v6, %v67_v4  ;;  %v65_v10 = vld [vmem:[#allocation2] sm:$0xff]  ;;  %s1519_s13 = smov [#allocation9]   ;;  %vm1086_vm3 = vcmask 261126   ;;  %vm1064_vm4 = vcmask 523264  }
  0x3a   :  { %v1614_v11 = vpack.c.bf16 %v161_v8, %v160_v7  ;;  %1186 = vmatprep.mubr.msk.f32.mxu0 %vm76_vm1, %v65_v10  ;;  %v66_v12 = vld [vmem:[#allocation2 + $0x8] sm:$0xff]  ;;  %v1118_v14 = vld [vmem:[%s1821_s3] ss:$0 sm:$0xff]  ;;  %s1517_s3 = smov 96   ;;  %s1104_s14 = sshll.u32 %s1519_s13, 4  ;;  %vm1066_vm5 = vcmask 785408   ;;  %s1105_s14 = int_to_ptr.vmem [resolvable:$true] %s1104_s14 }
  0x3b   :  { %1283 = vmatpush3.bf16.msra.mxu1 %v1611_v5  ;;  %1278 = vmatprep.subr.bf16.mxu0 %v1277_v9  ;;  %v1641_v15 = vld [vmem:[%s1822_s4] ss:$0 sm:$0xff]  ;;  %s1518_s4 = smov 32   ;;  %s1520_s15 = smov [#allocation8]  }
  0x3c   :  { %1284 = vmatprep.subr.bf16.mxu1 %v1513_v0  ;;  %1280 = vmatpush3.bf16.msra.mxu0 %v1277_v9  ;;  %s1094_s16 = sshll.u32 %s1520_s15, 4  ;;  %s1456_s17 = scalar_lea.vmem %s1105_s14, 32  ;;  %s1095_s16 = int_to_ptr.vmem [resolvable:$true] %s1094_s16 }
  0x3d   :  { %1287 = vmatprep.subr.bf16.mxu0 %v1513_v0  ;;  %p1457_p10 = scmp.ne.s32.totalorder %s1105_s14, %s1456_s17  ;;  %p1461_p11 = scmp.lt.s32.totalorder %s1105_s14, %s1105_s14 }
  0x3e   :  { %p1462_p12 = scmp.lt.s32.totalorder %s1456_s17, %s1456_s17 }
  0x3f   :  { %1286 = vmatpush3.bf16.msra.mxu1 %v1614_v11  ;;  %1187 = vmatmul.mubr.msk.f32.vlgmr.msra.gmra.mrb[0].mxu0 %vm76_vm1, %v66_v12 }
  0x40   :  { %1293 = vmatprep.subr.bf16.mxu1 %v1513_v0  ;;  %1289 = vmatpush3.bf16.msra.mxu0 %v1611_v5  ;;  %p1463_p13 = por %p1462_p12, %p1461_p11 }
  0x41   :  { %1208 = vmatprep.mubr.msk.f32.mxu0 %vm1514_vm0, %v1515_v1  ;;  %1290 = vmatprep.subr.bf16.mxu0 %v1513_v0 }
  0x42   :  { %1198 = vmatmul.mubr.f32.vlgmr.msra.gmra.mrb[0].mxu1 %v1515_v1  ;;  %p1464_p0 = pnand %p1463_p13, %p1457_p10 }
  0x43   :  { %1295 = vmatpush3.bf16.msra.mxu1 %v1611_v5  ;;  %1219 = vmatprep.mubr.msk.f32.mxu1 %vm1514_vm0, %v1515_v1 }
  0x44   :  { %1296 = vmatprep.subr.bf16.mxu1 %v1513_v0  ;;  %1292 = vmatpush3.bf16.msra.mxu0 %v1614_v11 }
  0x45   :  { %1299 = vmatprep.subr.bf16.mxu0 %v1513_v0 }
  0x47   :  { %1298 = vmatpush3.bf16.msra.mxu1 %v1614_v11 }
  0x48   :  { %1305 = vmatprep.subr.bf16.mxu1 %v1513_v0 }
 0x112   :  { %v1188_v13 = vpop.f32.mrb[0].mxu0 }
 0x113   :  { %v1643_v16 = vadd.f32 %v1188_v13, %v1118_v14  ;;  %v149_v17 = vpop.f32.mrb[1].mxu0 }
 0x114   :  { %v1647_v21 = vadd.f32 %v1118_v14, %v149_v17 }
 0x115   :  { %v239_v18 = vpop.f32.mrb[0].mxu1 }
 0x116   :  { %v240_v19 = vadd.f32 %v1641_v15, %v239_v18  ;;  %v1199_v20 = vpop.f32.mrb[1].mxu1 }
 0x118   :  { %251 = vrot.lane.b32.xlu0 %v240_v19, %s1516_s12  ;;  %v243_v22 = vadd.f32 %v240_v19, %v1647_v21 }
 0x11a   :  { %v1122_v23 = vmul.f32 -1.442695, %v243_v22 }
 0x11c   :  { %1342 = vpow2.f32 %v1122_v23 }
 0x126   :  { %v1343_v24 = vpop.eup %1342 }
 0x127   :  { %v247_v25 = vadd.f32 1.0, %v1343_v24 }
 0x129   :  { %1344 = vrcp.f32 %v247_v25 }
 0x133   :  { %v1345_v26 = vpop.eup %1344 }
 0x18a   :  { %v252_v27 = vpop.permute.xlu0 %251 }
 0x18b   :  { %v254_v28 = vmul.f32 %v1345_v26, %v252_v27 }
 0x18d   :  { %256 = vrot.lane.b32.xlu0 %v254_v28, %s1516_s12 }
 0x1ff   :  { %v257_v29 = vpop.permute.xlu0 %256 }
 0x200   :  { %v259_v30 = vadd.f32 %v257_v29, %v1647_v21 }
 0x202   :  { %1346 = vtanh.f32 %v259_v30 }
 0x20c   :  { %v1347_v31 = vpop.eup %1346 }
 0x20d   :  { %v261_v32 = vsub.f32 0.0, %v1347_v31 }
 0x20f   :  { %263 = vrot.lane.b32.xlu1 %v261_v32, %s1517_s3 }
 0x281   :  { %v264_v33 = vpop.permute.xlu1 %263 }
 0x282   :  { %v266_v34 = vmul.f32 %v1345_v26, %v264_v33 }
 0x284   :  { %268 = vrot.lane.b32.xlu1 %v266_v34, %s1518_s4 }
 0x2f6   :  { %v269_v35 = vpop.permute.xlu1 %268 }
 0x2f7   :  { %v271_v36 = vadd.f32 %v1347_v31, %v269_v35 }
 0x2f9   :  { %273 = vrot.lane.b32.xlu0 %v271_v36, %s1516_s12 }
 0x36b   :  { %v1655_v37 = vpop.permute.xlu0 %273 }
 0x36c   :  { %1209 = vmatmul.mubr.msk.f32.vlgmr.msra.gmra.mrb[2].mxu0 %vm169_vm2, %v1655_v37 }
 0x36d   :  { %1301 = vmatpush3.bf16.msra.mxu0 %v1611_v5  ;;  %1230 = vmatprep.mubr.msk.f32.mxu0 %vm1514_vm0, %v1515_v1 }
 0x36e   :  { %1302 = vmatprep.subr.bf16.mxu0 %v1513_v0 }
 0x371   :  { %1304 = vmatpush3.bf16.msra.mxu0 %v1614_v11 }
 0x372   :  { %1311 = vmatprep.subr.bf16.mxu0 %v1513_v0 }
 0x43f   :  { %v343_v38 = vpop.f32.mrb[2].mxu0 }
 0x440   :  { %v344_v39 = vadd.f32 %v1641_v15, %v343_v38  ;;  %v1210_v40 = vpop.f32.mrb[3].mxu0 }
 0x442   :  { %v348_v41 = vrot.slane %v344_v39, 6 }
 0x444   :  { %357 = vrot.lane.b32.xlu1 %v348_v41, %s1516_s12  ;;  %v350_v42 = vadd.f32 %v348_v41, %v1647_v21 }
 0x446   :  { %v1124_v43 = vmul.f32 -1.442695, %v350_v42 }
 0x448   :  { %1348 = vpow2.f32 %v1124_v43 }
 0x452   :  { %v1349_v44 = vpop.eup %1348 }
 0x453   :  { %v354_v45 = vadd.f32 1.0, %v1349_v44 }
 0x455   :  { %1350 = vrcp.f32 %v354_v45 }
 0x45f   :  { %v1351_v46 = vpop.eup %1350 }
 0x4b6   :  { %v358_v47 = vpop.permute.xlu1 %357 }
 0x4b7   :  { %v360_v48 = vmul.f32 %v1351_v46, %v358_v47 }
 0x4b9   :  { %362 = vrot.lane.b32.xlu0 %v360_v48, %s1516_s12 }
 0x52b   :  { %v363_v49 = vpop.permute.xlu0 %362 }
 0x52c   :  { %v365_v50 = vadd.f32 %v363_v49, %v1647_v21 }
 0x52e   :  { %1352 = vtanh.f32 %v365_v50 }
 0x538   :  { %v1353_v51 = vpop.eup %1352 }
 0x539   :  { %v368_v52 = vrot.slane %v1353_v51, 2 }
 0x53b   :  { %v370_v53 = vsub.f32 %v271_v36, %v368_v52 }
 0x53d   :  { %v372_v54 = vrot.slane %v370_v53, 6 }
 0x53f   :  { %373 = vrot.lane.b32.xlu1 %v372_v54, %s1517_s3 }
 0x5b1   :  { %v374_v55 = vpop.permute.xlu1 %373 }
 0x5b2   :  { %v376_v56 = vmul.f32 %v1351_v46, %v374_v55 }
 0x5b4   :  { %378 = vrot.lane.b32.xlu0 %v376_v56, %s1518_s4 }
 0x626   :  { %v379_v57 = vpop.permute.xlu0 %378 }
 0x627   :  { %v1672_v58 = vadd.f32 %v1353_v51, %v379_v57 }
 0x629   :  { %v383_v59 = vrot.slane %v1672_v58, 2 }
 0x62b   :  { %384 = vrot.lane.b32.xlu1 %v383_v59, %s1516_s12 }
 0x69d   :  { %v385_v60 = vpop.permute.xlu1 %384 }
 0x69e   :  { %1220 = vmatmul.mubr.msk.f32.vlgmr.msra.gmra.mrb[2].mxu1 %vm169_vm2, %v385_v60 }
 0x69f   :  { %1307 = vmatpush3.bf16.msra.mxu1 %v1611_v5  ;;  %1241 = vmatprep.mubr.msk.f32.mxu1 %vm1514_vm0, %v1515_v1 }
 0x6a0   :  { %1308 = vmatprep.subr.bf16.mxu1 %v1513_v0 }
 0x6a3   :  { %1310 = vmatpush3.bf16.msra.mxu1 %v1614_v11 }
 0x6a4   :  { %1317 = vmatprep.subr.bf16.mxu1 %v1513_v0 }
 0x771   :  { %v454_v61 = vpop.f32.mrb[2].mxu1 }
 0x772   :  { %v455_v62 = vadd.f32 %v1641_v15, %v454_v61  ;;  %v1221_v63 = vpop.f32.mrb[3].mxu1 }
 0x774   :  { %v459_v2 = vrot.slane %v455_v62, 4 }
 0x776   :  { %468 = vrot.lane.b32.xlu0 %v459_v2, %s1516_s12  ;;  %v461_v3 = vadd.f32 %v459_v2, %v1647_v21 }
 0x778   :  { %v1126_v4 = vmul.f32 -1.442695, %v461_v3 }
 0x77a   :  { %1354 = vpow2.f32 %v1126_v4 }
 0x784   :  { %v1355_v6 = vpop.eup %1354 }
 0x785   :  { %v465_v7 = vadd.f32 1.0, %v1355_v6 }
 0x787   :  { %1356 = vrcp.f32 %v465_v7 }
 0x791   :  { %v1357_v8 = vpop.eup %1356 }
 0x7e8   :  { %v469_v9 = vpop.permute.xlu0 %468 }
 0x7e9   :  { %v471_v10 = vmul.f32 %v1357_v8, %v469_v9 }
 0x7eb   :  { %473 = vrot.lane.b32.xlu1 %v471_v10, %s1516_s12 }
 0x85d   :  { %v474_v12 = vpop.permute.xlu1 %473 }
 0x85e   :  { %v476_v13 = vadd.f32 %v474_v12, %v1647_v21 }
 0x860   :  { %1358 = vtanh.f32 %v476_v13 }
 0x86a   :  { %v1359_v14 = vpop.eup %1358 }
 0x86b   :  { %v479_v17 = vrot.slane %v1359_v14, 2 }
 0x86d   :  { %v481_v18 = vsub.f32 %v1672_v58, %v479_v17 }
 0x86f   :  { %v483_v19 = vrot.slane %v481_v18, 6 }
 0x871   :  { %484 = vrot.lane.b32.xlu0 %v483_v19, %s1517_s3 }
 0x8e3   :  { %v485_v20 = vpop.permute.xlu0 %484 }
 0x8e4   :  { %v487_v22 = vmul.f32 %v1357_v8, %v485_v20 }
 0x8e6   :  { %489 = vrot.lane.b32.xlu1 %v487_v22, %s1518_s4 }
 0x958   :  { %v490_v23 = vpop.permute.xlu1 %489 }
 0x959   :  { %v1693_v24 = vadd.f32 %v1359_v14, %v490_v23 }
 0x95b   :  { %v494_v25 = vrot.slane %v1693_v24, 4 }
 0x95d   :  { %495 = vrot.lane.b32.xlu0 %v494_v25, %s1516_s12 }
 0x9cf   :  { %v496_v26 = vpop.permute.xlu0 %495 }
 0x9d0   :  { %1231 = vmatmul.mubr.msk.f32.vlgmr.msra.gmra.mrb[4].mxu0 %vm169_vm2, %v496_v26 }
 0x9d1   :  { %1313 = vmatpush3.bf16.msra.mxu0 %v1611_v5  ;;  %1252 = vmatprep.mubr.msk.f32.mxu0 %vm1514_vm0, %v1515_v1 }
 0x9d2   :  { %1314 = vmatprep.subr.bf16.mxu0 %v1513_v0 }
 0x9d5   :  { %1316 = vmatpush3.bf16.msra.mxu0 %v1614_v11 }
 0x9d6   :  { %1323 = vmatprep.subr.bf16.mxu0 %v1513_v0 }
 0xaa3   :  { %v565_v27 = vpop.f32.mrb[4].mxu0 }
 0xaa4   :  { %v566_v28 = vadd.f32 %v1641_v15, %v565_v27  ;;  %v1232_v29 = vpop.f32.mrb[5].mxu0 }
 0xaa6   :  { %v570_v30 = vrot.slane %v566_v28, 2 }
 0xaa8   :  { %579 = vrot.lane.b32.xlu1 %v570_v30, %s1516_s12  ;;  %v572_v31 = vadd.f32 %v570_v30, %v1647_v21 }
 0xaaa   :  { %v1128_v32 = vmul.f32 -1.442695, %v572_v31 }
 0xaac   :  { %1360 = vpow2.f32 %v1128_v32 }
 0xab6   :  { %v1361_v33 = vpop.eup %1360 }
 0xab7   :  { %v576_v34 = vadd.f32 1.0, %v1361_v33 }
 0xab9   :  { %1362 = vrcp.f32 %v576_v34 }
 0xac3   :  { %v1363_v35 = vpop.eup %1362 }
 0xb1a   :  { %v580_v36 = vpop.permute.xlu1 %579 }
 0xb1b   :  { %v582_v38 = vmul.f32 %v1363_v35, %v580_v36 }
 0xb1d   :  { %584 = vrot.lane.b32.xlu0 %v582_v38, %s1516_s12 }
 0xb8f   :  { %v585_v39 = vpop.permute.xlu0 %584 }
 0xb90   :  { %v587_v40 = vadd.f32 %v585_v39, %v1647_v21 }
 0xb92   :  { %1364 = vtanh.f32 %v587_v40 }
 0xb9c   :  { %v1365_v41 = vpop.eup %1364 }
 0xb9d   :  { %v590_v42 = vrot.slane %v1365_v41, 2 }
 0xb9f   :  { %v592_v43 = vsub.f32 %v1693_v24, %v590_v42 }
 0xba1   :  { %v594_v44 = vrot.slane %v592_v43, 6 }
 0xba3   :  { %595 = vrot.lane.b32.xlu1 %v594_v44, %s1517_s3 }
 0xc15   :  { %v596_v45 = vpop.permute.xlu1 %595 }
 0xc16   :  { %v598_v46 = vmul.f32 %v1363_v35, %v596_v45 }
 0xc18   :  { %600 = vrot.lane.b32.xlu0 %v598_v46, %s1518_s4 }
 0xc8a   :  { %v601_v47 = vpop.permute.xlu0 %600 }
 0xc8b   :  { %v1714_v48 = vadd.f32 %v1365_v41, %v601_v47 }
 0xc8d   :  { %v605_v49 = vrot.slane %v1714_v48, 6 }
 0xc8f   :  { %606 = vrot.lane.b32.xlu1 %v605_v49, %s1516_s12 }
 0xd01   :  { %v607_v21 = vpop.permute.xlu1 %606 }
 0xd02   :  { %1242 = vmatmul.mubr.msk.f32.vlgmr.msra.gmra.mrb[4].mxu1 %vm169_vm2, %v607_v21 }
 0xd03   :  { %1319 = vmatpush3.bf16.msra.mxu1 %v1611_v5  ;;  %1263 = vmatprep.mubr.msk.f32.mxu1 %vm1514_vm0, %v1515_v1 }
 0xd04   :  { %1320 = vmatprep.subr.bf16.mxu1 %v1513_v0 }
 0xd07   :  { %1322 = vmatpush3.bf16.msra.mxu1 %v1614_v11 }
 0xdd5   :  { %v676_v50 = vpop.f32.mrb[4].mxu1 }
 0xdd6   :  { %v677_v51 = vadd.f32 %v1641_v15, %v676_v50  ;;  %v1243_v52 = vpop.f32.mrb[5].mxu1 }
 0xdd8   :  { %688 = vrot.lane.b32.xlu0 %v677_v51, %s1516_s12  ;;  %v680_v53 = vadd.f32 %v677_v51, %v1643_v16 }
 0xdda   :  { %v1130_v54 = vmul.f32 -1.442695, %v680_v53 }
 0xddc   :  { %1366 = vpow2.f32 %v1130_v54 }
 0xde6   :  { %v1367_v55 = vpop.eup %1366 }
 0xde7   :  { %v684_v56 = vadd.f32 1.0, %v1367_v55 }
 0xde9   :  { %1368 = vrcp.f32 %v684_v56 }
 0xdf3   :  { %v1369_v57 = vpop.eup %1368 }
 0xe4a   :  { %v689_v60 = vpop.permute.xlu0 %688 }
 0xe4b   :  { %v691_v61 = vmul.f32 %v1369_v57, %v689_v60 }
 0xe4d   :  { %693 = vrot.lane.b32.xlu1 %v691_v61, %s1516_s12 }
 0xebf   :  { %v694_v62 = vpop.permute.xlu1 %693 }
 0xec0   :  { %v696_v63 = vadd.f32 %v694_v62, %v1643_v16 }
 0xec2   :  { %1370 = vtanh.f32 %v696_v63 }
 0xecc   :  { %v1371_v2 = vpop.eup %1370 }
 0xecd   :  { %v699_v3 = vrot.slane %v1371_v2, 2 }
 0xecf   :  { %v701_v4 = vsub.f32 %v1714_v48, %v699_v3 }
 0xed1   :  { %v703_v6 = vrot.slane %v701_v4, 6 }
 0xed3   :  { %704 = vrot.lane.b32.xlu0 %v703_v6, %s1517_s3 }
 0xf45   :  { %v705_v7 = vpop.permute.xlu0 %704 }
 0xf46   :  { %v707_v8 = vmul.f32 %v1369_v57, %v705_v7 }
 0xf48   :  { %709 = vrot.lane.b32.xlu1 %v707_v8, %s1518_s4 }
 0xfba   :  { %v710_v9 = vpop.permute.xlu1 %709 }
 0xfbb   :  { %v712_v10 = vadd.f32 %v1371_v2, %v710_v9 }
 0xfbd   :  { %714 = vrot.lane.b32.xlu0 %v712_v10, %s1516_s12 }
0x102f   :  { %v1735_v12 = vpop.permute.xlu0 %714 }
0x1030   :  { %1253 = vmatmul.mubr.msk.f32.vlgmr.msra.gmra.mrb[6].mxu0 %vm169_vm2, %v1735_v12 }
0x1031   :  { %1325 = vmatpush3.bf16.msra.mxu0 %v1611_v5  ;;  %1274 = vmatprep.mubr.msk.f32.mxu0 %vm1514_vm0, %v1515_v1 }
0x1032   :  { %1326 = vmatprep.subr.bf16.mxu0 %v1513_v0 }
0x1035   :  { %1328 = vmatpush3.bf16.msra.mxu0 %v1614_v11 }
0x1103   :  { %v784_v13 = vpop.f32.mrb[6].mxu0 }
0x1104   :  { %v785_v14 = vadd.f32 %v1641_v15, %v784_v13  ;;  %v1254_v17 = vpop.f32.mrb[7].mxu0 }
0x1106   :  { %v789_v18 = vrot.slane %v785_v14, 6 }
0x1108   :  { %798 = vrot.lane.b32.xlu1 %v789_v18, %s1516_s12  ;;  %v791_v19 = vadd.f32 %v789_v18, %v1643_v16 }
0x110a   :  { %v1132_v20 = vmul.f32 -1.442695, %v791_v19 }
0x110c   :  { %1372 = vpow2.f32 %v1132_v20 }
0x1116   :  { %v1373_v22 = vpop.eup %1372 }
0x1117   :  { %v795_v5 = vadd.f32 1.0, %v1373_v22 }
0x1119   :  { %1374 = vrcp.f32 %v795_v5 }
0x1123   :  { %v1375_v23 = vpop.eup %1374 }
0x117a   :  { %v799_v1 = vpop.permute.xlu1 %798 }
0x117b   :  { %v801_v26 = vmul.f32 %v1375_v23, %v799_v1 }
0x117d   :  { %803 = vrot.lane.b32.xlu0 %v801_v26, %s1516_s12 }
0x11ef   :  { %v804_v0 = vpop.permute.xlu0 %803 }
0x11f0   :  { %v806_v11 = vadd.f32 %v804_v0, %v1643_v16 }
0x11f2   :  { %1376 = vtanh.f32 %v806_v11 }
0x11fc   :  { %v1377_v27 = vpop.eup %1376 }
0x11fd   :  { %v809_v28 = vrot.slane %v1377_v27, 2 }
0x11ff   :  { %v811_v29 = vsub.f32 %v712_v10, %v809_v28 }
0x1201   :  { %v813_v30 = vrot.slane %v811_v29, 6 }
0x1203   :  { %814 = vrot.lane.b32.xlu1 %v813_v30, %s1517_s3 }
0x1275   :  { %v815_v31 = vpop.permute.xlu1 %814 }
0x1276   :  { %v817_v32 = vmul.f32 %v1375_v23, %v815_v31 }
0x1278   :  { %819 = vrot.lane.b32.xlu0 %v817_v32, %s1518_s4 }
0x12ea   :  { %v820_v33 = vpop.permute.xlu0 %819 }
0x12eb   :  { %v1751_v34 = vadd.f32 %v1377_v27, %v820_v33 }
0x12ed   :  { %v824_v35 = vrot.slane %v1751_v34, 2 }
0x12ef   :  { %825 = vrot.lane.b32.xlu1 %v824_v35, %s1516_s12 }
0x1361   :  { %v826_v36 = vpop.permute.xlu1 %825 }
0x1362   :  { %1264 = vmatmul.mubr.msk.f32.vlgmr.msra.gmra.mrb[6].mxu1 %vm169_vm2, %v826_v36 }
0x1435   :  { %v895_v38 = vpop.f32.mrb[6].mxu1 }
0x1436   :  { %v896_v39 = vadd.f32 %v1641_v15, %v895_v38  ;;  %v1265_v40 = vpop.f32.mrb[7].mxu1 }
0x1438   :  { %v900_v41 = vrot.slane %v896_v39, 4 }
0x143a   :  { %909 = vrot.lane.b32.xlu0 %v900_v41, %s1516_s12  ;;  %v902_v42 = vadd.f32 %v900_v41, %v1643_v16 }
0x143c   :  { %v1134_v43 = vmul.f32 -1.442695, %v902_v42 }
0x143e   :  { %1378 = vpow2.f32 %v1134_v43 }
0x1448   :  { %v1379_v44 = vpop.eup %1378 }
0x1449   :  { %v906_v45 = vadd.f32 1.0, %v1379_v44 }
0x144b   :  { %1380 = vrcp.f32 %v906_v45 }
0x1455   :  { %v1381_v46 = vpop.eup %1380 }
0x14ac   :  { %v910_v47 = vpop.permute.xlu0 %909 }
0x14ad   :  { %v912_v21 = vmul.f32 %v1381_v46, %v910_v47 }
0x14af   :  { %914 = vrot.lane.b32.xlu1 %v912_v21, %s1516_s12 }
0x1521   :  { %v915_v50 = vpop.permute.xlu1 %914 }
0x1522   :  { %v917_v51 = vadd.f32 %v915_v50, %v1643_v16 }
0x1524   :  { %1382 = vtanh.f32 %v917_v51 }
0x152e   :  { %v1383_v52 = vpop.eup %1382 }
0x152f   :  { %v920_v53 = vrot.slane %v1383_v52, 2 }
0x1531   :  { %v922_v54 = vsub.f32 %v1751_v34, %v920_v53 }
0x1533   :  { %v924_v55 = vrot.slane %v922_v54, 6 }
0x1535   :  { %925 = vrot.lane.b32.xlu0 %v924_v55, %s1517_s3 }
0x15a7   :  { %v926_v56 = vpop.permute.xlu0 %925 }
0x15a8   :  { %v928_v57 = vmul.f32 %v1381_v46, %v926_v56 }
0x15aa   :  { %930 = vrot.lane.b32.xlu1 %v928_v57, %s1518_s4 }
0x161c   :  { %v931_v60 = vpop.permute.xlu1 %930 }
0x161d   :  { %v933_v61 = vadd.f32 %v1383_v52, %v931_v60 }
0x161f   :  { %v935_v62 = vrot.slane %v933_v61, 4 }
0x1621   :  { %936 = vrot.lane.b32.xlu0 %v935_v62, %s1516_s12 }
0x1693   :  { %v937_v63 = vpop.permute.xlu0 %936 }
0x1694   :  { %1275 = vmatmul.mubr.msk.f32.vlgmr.msra.gmra.mrb[8].mxu0 %vm169_vm2, %v937_v63 }
0x1767   :  { %v1006_v2 = vpop.f32.mrb[8].mxu0 }
0x1768   :  { %v1007_v3 = vadd.f32 %v1641_v15, %v1006_v2  ;;  %v1276_v4 = vpop.f32.mrb[9].mxu0 }
0x176a   :  { %v1011_v6 = vrot.slane %v1007_v3, 2 }
0x176c   :  { %1020 = vrot.lane.b32.xlu1 %v1011_v6, %s1516_s12  ;;  %v1013_v7 = vadd.f32 %v1011_v6, %v1643_v16 }
0x176e   :  { %v1136_v8 = vmul.f32 -1.442695, %v1013_v7 }
0x1770   :  { %1384 = vpow2.f32 %v1136_v8 }
0x177a   :  { %v1385_v9 = vpop.eup %1384 }
0x177b   :  { %v1017_v10 = vadd.f32 1.0, %v1385_v9 }
0x177d   :  { %1386 = vrcp.f32 %v1017_v10 }
0x1787   :  { %v1387_v13 = vpop.eup %1386 }
0x17de   :  { %v1021_v14 = vpop.permute.xlu1 %1020 }
0x17df   :  { %v1023_v17 = vmul.f32 %v1387_v13, %v1021_v14 }
0x17e1   :  { %1025 = vrot.lane.b32.xlu0 %v1023_v17, %s1516_s12 }
0x1853   :  { %v1026_v18 = vpop.permute.xlu0 %1025 }
0x1854   :  { %v1028_v19 = vadd.f32 %v1026_v18, %v1643_v16 }
0x1856   :  { %1388 = vtanh.f32 %v1028_v19 }
0x1860   :  { %v1389_v15 = vpop.eup %1388 }
0x1861   :  { %v1031_v20 = vrot.slane %v1389_v15, 2 }
0x1863   :  { %v1033_v22 = vsub.f32 %v933_v61, %v1031_v20 }
0x1865   :  { %v1035_v5 = vrot.slane %v1033_v22, 6 }
0x1867   :  { %1036 = vrot.lane.b32.xlu1 %v1035_v5, %s1517_s3 }
0x186b   :  { %1046 = vrot.lane.b32.xlu1 %v383_v59, %s1517_s3 }
0x186f   :  { %1050 = vrot.lane.b32.xlu1 %v605_v49, %s1518_s4 }
0x18d9   :  { %v1037_v23 = vpop.permute.xlu1 %1036 }
0x18da   :  { %v1039_v1 = vmul.f32 %v1387_v13, %v1037_v23 }
0x18dc   :  { %1041 = vrot.lane.b32.xlu0 %v1039_v1, %s1518_s4 }
0x18dd   :  { %v1047_v58 = vpop.permute.xlu1 %1046 }
0x18de   :  { %v1063_v48 = vsel %vm169_vm2, %v1655_v37, %v1047_v58 }
0x18df   :  { %v1065_v28 = vsel %vm1064_vm4, %v1063_v48, %v494_v25 }
0x18e0   :  { %1054 = vrot.lane.b32.xlu0 %v824_v35, %s1517_s3 }
0x18e1   :  { %v1051_v59 = vpop.permute.xlu1 %1050 }
0x194e   :  { %v1042_v16 = vpop.permute.xlu0 %1041 }
0x194f   :  { %v1044_v26 = vadd.f32 %v1389_v15, %v1042_v16 }
0x1951   :  { %v1059_v0 = vrot.slane %v1044_v26, 6  ;;  %1083 = vrot.lane.b32.xlu1 %v1044_v26, %s1516_s12 }
0x1952   :  { %v1055_v11 = vpop.permute.xlu0 %1054 }
0x1953   :  { %1060 = vrot.lane.b32.xlu0 %v1059_v0, %s1518_s4  ;;  %v1068_v49 = vsel %vm169_vm2, %v1735_v12, %v1055_v11 }
0x1954   :  { %v1069_v29 = vsel %vm1064_vm4, %v1068_v49, %v935_v62 }
0x19c3   :  { %v1084_v27 = vpop.permute.xlu1 %1083 }
0x19c4   :  { %1087 = vst.msk [vmem:[#allocation9 - $0x6] sm:$0xc0] %vm1086_vm3, %v1084_v27 }
0x19c5   :  { %v1061_v30 = vpop.permute.xlu0 %1060 }
0x19c6   :  { %1467 = shalt.err (!%p1464_p0)
}
0x19c7   :  { %s1468_s20 = scalar_lea.hbm %s1824_s6, 32 }
0x19c8   :  { %p1469_p1 = scmp.ne.s32.totalorder %s1824_s6, %s1468_s20  ;;  %p1472_p2 = scmp.lt.u32.totalorder %s1468_s20, %s1824_s6 }
0x19ca   :  { %p1474_p3 = pnand %p1472_p2, %p1469_p1 }
0x19cc   :  { %1477 = shalt.err (!%p1474_p3)
}
0x19cd   :  { %1107 = dma.vmem_to_hbm [thread:$0]  %s1105_s14, 32, %s1824_s6, [#allocation10]   ;;  %v1067_v37 = vsel %vm1066_vm5, %v1065_v28, %v1051_v59  ;;  %v1070_v24 = vsel %vm1066_vm5, %v1069_v29, %v1061_v30 }
0x19ce   :  { %v1073_v25 = vcombine.low %v1067_v37, %v1070_v24  ;;  %s1478_s27 = scalar_lea.vmem %s1095_s16, 64  ;;  %p1483_p5 = scmp.lt.s32.totalorder %s1095_s16, %s1095_s16 }
0x19cf   :  { %p1479_p4 = scmp.ne.s32.totalorder %s1095_s16, %s1478_s27  ;;  %p1484_p6 = scmp.lt.s32.totalorder %s1478_s27, %s1478_s27 }
0x19d0   :  { %1137 = vst.sshfl [vmem:[#allocation8] sm:$0x33 pattern:$0x76325410] %v1073_v25 }
0x19d1   :  { %p1485_p7 = por %p1484_p6, %p1483_p5 }
0x19d3   :  { %p1486_p8 = pnand %p1485_p7, %p1479_p4 }
0x19d5   :  { %1489 = shalt.err (!%p1486_p8)
}
0x19d6   :  { %s1490_s30 = scalar_lea.hbm %s1823_s5, 64 }
0x19d7   :  { %p1491_p9 = scmp.ne.s32.totalorder %s1823_s5, %s1490_s30  ;;  %p1494_p10 = scmp.lt.u32.totalorder %s1490_s30, %s1823_s5 }
0x19d9   :  { %p1496_p11 = pnand %p1494_p10, %p1491_p9 }
0x19db   :  { %1499 = shalt.err (!%p1496_p11)
}
0x19dc   :  { %1097 = dma.vmem_to_hbm [thread:$0]  %s1095_s16, 64, %s1823_s5, [#allocation4]  }
0x19dd   :  { %1504 = dma.done.wait [#allocation4], 64  }
0x19de   :  { %1505 = vsyncadd [#allocation4], 4294967232 }
0x19df   :  { %1506 = dma.done.wait [#allocation10], 32  }
0x19e0   :  { %1507 = vsyncadd [#allocation10], 4294967264 }
0x19e1   :  { %1114 = vsyncpa [#allocation3], 1 }
0x19e2   :  { %1115 = vsyncpa [#allocation6], 1 }
0x19e3   :  { %1116 = vsyncpa [#allocation4], 1 }
0x19e4   :  { %1117 = vsyncpa [#allocation10], 1 }

</bundles_post_ra>
